<compile_context>
chip_gen: v6e
topology: v6e:2x2x1
jax: 0.10.0
libtpu: 0.0.40
codegen_flags: <defaults>
</compile_context>

<pallas_src>
import functools

import jax
import jax.numpy as jnp
from jax.experimental import pallas as pl
from jax.experimental.pallas import tpu as pltpu


def _round_up(x, m):
    return ((x + m - 1) // m) * m


def _critic_kernel(x_ref, emb_ref, w_sa_ref, b_in_ref, w_hid_ref, b_hid_ref,
                   w_out_ref, b_out_ref, out_ref, *, n_hidden):
    """One batch tile of the full MLP. All matmuls accumulate in f32."""
    cdtype = w_sa_ref.dtype  # matmul operand dtype (f32 or bf16)

    # in_layer: (x_sa @ w_sa) + species_embedding + bias, then ReLU (f32 epilogue).
    acc = jnp.dot(x_ref[...], w_sa_ref[...], preferred_element_type=jnp.float32)
    x = jnp.maximum(acc + emb_ref[...] + b_in_ref[...], 0.0)

    # hidden_layers: n_hidden x (Linear + ReLU).
    for i in range(n_hidden):
        acc = jnp.dot(x.astype(cdtype), w_hid_ref[i],
                      preferred_element_type=jnp.float32)
        x = jnp.maximum(acc + b_hid_ref[i], 0.0)

    # out_layer: lane-dense (TB, 128) store; only column 0 carries the real q.
    q = jnp.dot(x.astype(cdtype), w_out_ref[...],
                preferred_element_type=jnp.float32) + b_out_ref[...]
    out_ref[...] = q.astype(out_ref.dtype)


def species_critic_forward(state, action, species_ids, params, *,
                           num_species, block_batch=512,
                           compute_dtype=jnp.float32):
    """SpeciesCriticNet forward via a single batch-tiled Pallas TPU kernel."""
    del num_species  # implied by params; kept for API parity with the module
    w_in, b_in, w_hid, b_hid, w_out, b_out = params
    n_hidden = w_hid.shape[0]

    batch = state.shape[0]
    sa_dim = state.shape[1] + action.shape[1]
    hidden = w_in.shape[1]

    # ---- glue (plain JAX): embedding-add replaces one_hot + concat ----------
    # concat(sa, one_hot) @ w_in == sa @ w_in[:sa_dim] + w_in[sa_dim:][ids]
    w_sa = w_in[:sa_dim]                                   # (sa_dim, H)
    w_spec = w_in[sa_dim:]                                 # (num_species, H)
    spec_emb = jnp.take(w_spec, species_ids.reshape(-1).astype(jnp.int32),
                        axis=0)                            # (batch, H)
    x_sa = jnp.concatenate([state, action], axis=-1)       # (batch, sa_dim)

    # ---- pad to TPU-friendly (lane-dense) shapes -----------------------------
    LANE = 128
    hp = _round_up(hidden, LANE)        # padded hidden width
    dp = _round_up(sa_dim, LANE)        # padded input width
    outw = LANE                         # lane-dense output slab width
    tb = min(block_batch, _round_up(batch, 8))   # batch tile (multiple of 8)
    bp = _round_up(batch, tb)           # padded batch

    f32 = jnp.float32

    def pad2(a, rows, cols):
        return jnp.pad(a, ((0, rows - a.shape[0]), (0, cols - a.shape[1])))

    x_p = pad2(x_sa.astype(f32), bp, dp).astype(compute_dtype)
    emb_p = pad2(spec_emb.astype(f32), bp, hp)                       # f32 epilogue
    w_sa_p = pad2(w_sa.astype(f32), dp, hp).astype(compute_dtype)
    b_in_p = pad2(b_in.reshape(1, -1).astype(f32), 1, hp)
    w_hid_p = jnp.pad(w_hid.astype(f32),
                      ((0, 0), (0, hp - hidden), (0, hp - hidden))
                      ).astype(compute_dtype)
    b_hid_p = jnp.pad(b_hid.reshape(n_hidden, 1, -1).astype(f32),
                      ((0, 0), (0, 0), (0, hp - hidden)))
    w_out_p = pad2(w_out.astype(f32), hp, outw).astype(compute_dtype)
    b_out_p = pad2(b_out.reshape(1, -1).astype(f32), 1, outw)

    grid = (bp // tb,)

    def resident(shape):
        # Weights/biases: same block every grid step -> stay resident in VMEM.
        return pl.BlockSpec(shape, lambda i: (0,) * len(shape))

    kernel = functools.partial(_critic_kernel, n_hidden=n_hidden)
    out = pl.pallas_call(
        kernel,
        out_shape=jax.ShapeDtypeStruct((bp, outw), jnp.float32),
        grid=grid,
        in_specs=[
            pl.BlockSpec((tb, dp), lambda i: (i, 0)),      # x (batch-tiled)
            pl.BlockSpec((tb, hp), lambda i: (i, 0)),      # species embedding rows
            resident((dp, hp)),                            # w_sa
            resident((1, hp)),                             # b_in
            resident((n_hidden, hp, hp)),                  # w_hid
            resident((n_hidden, 1, hp)),                   # b_hid
            resident((hp, outw)),                          # w_out (lane-padded)
            resident((1, outw)),                           # b_out (lane-padded)
        ],
        out_specs=pl.BlockSpec((tb, outw), lambda i: (i, 0)),
        compiler_params=pltpu.CompilerParams(
            dimension_semantics=("parallel",)),
    )(x_p, emb_p, w_sa_p, b_in_p, w_hid_p, b_hid_p, w_out_p, b_out_p)

    # Real q is column 0 of the lane-dense slab; drop batch padding too.
    return out[:batch, :1]


def init_params(key, state_dim, action_dim, num_species, hidden_size, n_hidden):
    """Deterministic synthetic init (Xavier-uniform-ish, like weights_init_)."""
    in_dim = state_dim + action_dim + num_species
    ks = jax.random.split(key, 3 + n_hidden)

    def xavier(k, fan_in, fan_out):
        limit = jnp.sqrt(6.0 / (fan_in + fan_out))
        return jax.random.uniform(k, (fan_in, fan_out), jnp.float32,
                                  minval=-limit, maxval=limit)

    w_in = xavier(ks[0], in_dim, hidden_size)
    b_in = jnp.zeros((1, hidden_size), jnp.float32)
    w_hid = jnp.stack([xavier(ks[1 + i], hidden_size, hidden_size)
                       for i in range(n_hidden)], axis=0)        # (n_hidden, H, H)
    b_hid = jnp.zeros((n_hidden, 1, hidden_size), jnp.float32)   # (n_hidden, 1, H)
    w_out = xavier(ks[1 + n_hidden], hidden_size, 1)
    b_out = jnp.zeros((1, 1), jnp.float32)
    return w_in, b_in, w_hid, b_hid, w_out, b_out


def reference_forward(state, action, species_ids, params, *, num_species):
    """Pure-JAX reference matching the PyTorch module exactly (one_hot + concat)."""
    w_in, b_in, w_hid, b_hid, w_out, b_out = params
    one_hot = jax.nn.one_hot(species_ids.reshape(-1), num_species,
                             dtype=state.dtype)
    x = jnp.concatenate([state, action, one_hot], axis=-1)
    x = jnp.maximum(x @ w_in + b_in, 0.0)
    for i in range(w_hid.shape[0]):
        x = jnp.maximum(x @ w_hid[i] + b_hid[i], 0.0)
    return x @ w_out + b_out


if __name__ == "__main__":
    state_dim, action_dim, num_species = 12, 6, 6
    hidden_size, n_hidden = 32, 2

    key = jax.random.PRNGKey(0)
    k_state, k_action, k_species, k_params, k2 = jax.random.split(key, 5)
    params = init_params(k_params, state_dim, action_dim, num_species,
                         hidden_size, n_hidden)

    # --- case 1: small batch, exact f32 path ---------------------------------
    batch = 8
    state = jax.random.normal(k_state, (batch, state_dim), jnp.float32)
    action = jax.random.normal(k_action, (batch, action_dim), jnp.float32)
    species_ids = jax.random.randint(k_species, (batch,), 0, num_species,
                                     dtype=jnp.int32)

    out = species_critic_forward(state, action, species_ids, params,
                                 num_species=num_species)
    out = jax.block_until_ready(out)
    ref = reference_forward(state, action, species_ids, params,
                            num_species=num_species)
    assert out.shape == (batch, 1), out.shape
    assert jnp.allclose(out, ref, atol=1e-5, rtol=1e-5), (out, ref)

    # --- case 2: batch not divisible by tile, multi-step parallel grid -------
    batch2 = 40
    ks1, ks2, ks3 = jax.random.split(k2, 3)
    state2 = jax.random.normal(ks1, (batch2, state_dim), jnp.float32)
    action2 = jax.random.normal(ks2, (batch2, action_dim), jnp.float32)
    species2 = jax.random.randint(ks3, (batch2,), 0, num_species,
                                  dtype=jnp.int32)
    out2 = species_critic_forward(state2, action2, species2, params,
                                  num_species=num_species, block_batch=16)
    out2 = jax.block_until_ready(out2)
    ref2 = reference_forward(state2, action2, species2, params,
                             num_species=num_species)
    assert out2.shape == (batch2, 1), out2.shape
    assert jnp.allclose(out2, ref2, atol=1e-5, rtol=1e-5)

    # --- case 3: bf16 matmul operands (v6e/v7x fast path), f32 accumulate ----
    out_bf16 = species_critic_forward(state, action, species_ids, params,
                                      num_species=num_species,
                                      compute_dtype=jnp.bfloat16)
    out_bf16 = jax.block_until_ready(out_bf16)
    assert out_bf16.shape == (batch, 1)
    assert jnp.allclose(out_bf16, ref, atol=1e-1, rtol=1e-1), (out_bf16, ref)

    print("KERNEL_OK")
</pallas_src>

<mosaic_0001>
module attributes {stable_mosaic.version = 11 : i64} {
  func.func @_critic_kernel(%arg0: i32, %arg1: memref<8x128xf32, #tpu.memory_space<vmem>>, %arg2: memref<8x128xf32, #tpu.memory_space<vmem>>, %arg3: memref<128x128xf32, #tpu.memory_space<vmem>>, %arg4: memref<1x128xf32, #tpu.memory_space<vmem>>, %arg5: memref<2x128x128xf32, #tpu.memory_space<vmem>>, %arg6: memref<2x1x128xf32, #tpu.memory_space<vmem>>, %arg7: memref<128x128xf32, #tpu.memory_space<vmem>>, %arg8: memref<1x128xf32, #tpu.memory_space<vmem>>, %arg9: memref<8x128xf32, #tpu.memory_space<vmem>>) attributes {dimension_semantics = [#tpu.dimension_semantics<parallel>], iteration_bounds = array<i64: 1>, scalar_prefetch = 0 : i64, scratch_operands = 0 : i64, tpu.core_type = #tpu.core_type<tc>, window_params = [{transform_indices = @transform_0, window_bounds = array<i64: 8, 128>}, {transform_indices = @transform_1, window_bounds = array<i64: 8, 128>}, {pipeline_mode = #tpu.pipeline_mode<synchronous>, transform_indices = @transform_2, window_bounds = array<i64: 128, 128>}, {pipeline_mode = #tpu.pipeline_mode<synchronous>, transform_indices = @transform_3, window_bounds = array<i64: 1, 128>}, {pipeline_mode = #tpu.pipeline_mode<synchronous>, transform_indices = @transform_4, window_bounds = array<i64: 2, 128, 128>}, {pipeline_mode = #tpu.pipeline_mode<synchronous>, transform_indices = @transform_5, window_bounds = array<i64: 2, 1, 128>}, {pipeline_mode = #tpu.pipeline_mode<synchronous>, transform_indices = @transform_6, window_bounds = array<i64: 128, 128>}, {pipeline_mode = #tpu.pipeline_mode<synchronous>, transform_indices = @transform_7, window_bounds = array<i64: 1, 128>}, {transform_indices = @transform_8, window_bounds = array<i64: 8, 128>}]} {
    %c0 = arith.constant 0 : index
    %c0_0 = arith.constant 0 : index
    %0 = vector.load %arg1[%c0, %c0_0] : memref<8x128xf32, #tpu.memory_space<vmem>>, vector<8x128xf32>
    %c0_1 = arith.constant 0 : index
    %c0_2 = arith.constant 0 : index
    %1 = vector.load %arg3[%c0_1, %c0_2] : memref<128x128xf32, #tpu.memory_space<vmem>>, vector<128x128xf32>
    %cst = arith.constant dense<0.000000e+00> : vector<8x128xf32>
    %2 = tpu.matmul %0, %1, %cst {dimension_numbers = #tpu.dot_dimension_numbers<[1], [0], [0], [1], [0, 0, 1, 1], [], []>} : vector<8x128xf32>, vector<128x128xf32>, vector<8x128xf32> -> vector<8x128xf32>
    %c0_3 = arith.constant 0 : index
    %c0_4 = arith.constant 0 : index
    %3 = vector.load %arg2[%c0_3, %c0_4] : memref<8x128xf32, #tpu.memory_space<vmem>>, vector<8x128xf32>
    %4 = arith.addf %2, %3 : vector<8x128xf32>
    %c0_5 = arith.constant 0 : index
    %c0_6 = arith.constant 0 : index
    %5 = vector.load %arg4[%c0_5, %c0_6] : memref<1x128xf32, #tpu.memory_space<vmem>>, vector<1x128xf32>
    %6 = vector.broadcast %5 : vector<1x128xf32> to vector<8x128xf32>
    %7 = arith.addf %4, %6 : vector<8x128xf32>
    %cst_7 = arith.constant 0.000000e+00 : f32
    %8 = vector.broadcast %cst_7 : f32 to vector<8x128xf32>
    %9 = arith.maximumf %7, %8 : vector<8x128xf32>
    %c0_8 = arith.constant 0 : index
    %c0_9 = arith.constant 0 : index
    %c0_10 = arith.constant 0 : index
    %10 = vector.load %arg5[%c0_8, %c0_9, %c0_10] : memref<2x128x128xf32, #tpu.memory_space<vmem>>, vector<1x128x128xf32>
    %11 = vector.shape_cast %10 : vector<1x128x128xf32> to vector<128x128xf32>
    %cst_11 = arith.constant dense<0.000000e+00> : vector<8x128xf32>
    %12 = tpu.matmul %9, %11, %cst_11 {dimension_numbers = #tpu.dot_dimension_numbers<[1], [0], [0], [1], [0, 0, 1, 1], [], []>} : vector<8x128xf32>, vector<128x128xf32>, vector<8x128xf32> -> vector<8x128xf32>
    %c0_12 = arith.constant 0 : index
    %c0_13 = arith.constant 0 : index
    %c0_14 = arith.constant 0 : index
    %13 = vector.load %arg6[%c0_12, %c0_13, %c0_14] : memref<2x1x128xf32, #tpu.memory_space<vmem>>, vector<1x1x128xf32>
    %14 = vector.shape_cast %13 : vector<1x1x128xf32> to vector<1x128xf32>
    %15 = vector.broadcast %14 : vector<1x128xf32> to vector<8x128xf32>
    %16 = arith.addf %12, %15 : vector<8x128xf32>
    %cst_15 = arith.constant 0.000000e+00 : f32
    %17 = vector.broadcast %cst_15 : f32 to vector<8x128xf32>
    %18 = arith.maximumf %16, %17 : vector<8x128xf32>
    %c1 = arith.constant 1 : index
    %c0_16 = arith.constant 0 : index
    %c0_17 = arith.constant 0 : index
    %19 = vector.load %arg5[%c1, %c0_16, %c0_17] : memref<2x128x128xf32, #tpu.memory_space<vmem>>, vector<1x128x128xf32>
    %20 = vector.shape_cast %19 : vector<1x128x128xf32> to vector<128x128xf32>
    %cst_18 = arith.constant dense<0.000000e+00> : vector<8x128xf32>
    %21 = tpu.matmul %18, %20, %cst_18 {dimension_numbers = #tpu.dot_dimension_numbers<[1], [0], [0], [1], [0, 0, 1, 1], [], []>} : vector<8x128xf32>, vector<128x128xf32>, vector<8x128xf32> -> vector<8x128xf32>
    %c1_19 = arith.constant 1 : index
    %c0_20 = arith.constant 0 : index
    %c0_21 = arith.constant 0 : index
    %22 = vector.load %arg6[%c1_19, %c0_20, %c0_21] : memref<2x1x128xf32, #tpu.memory_space<vmem>>, vector<1x1x128xf32>
    %23 = vector.shape_cast %22 : vector<1x1x128xf32> to vector<1x128xf32>
    %24 = vector.broadcast %23 : vector<1x128xf32> to vector<8x128xf32>
    %25 = arith.addf %21, %24 : vector<8x128xf32>
    %cst_22 = arith.constant 0.000000e+00 : f32
    %26 = vector.broadcast %cst_22 : f32 to vector<8x128xf32>
    %27 = arith.maximumf %25, %26 : vector<8x128xf32>
    %c0_23 = arith.constant 0 : index
    %c0_24 = arith.constant 0 : index
    %28 = vector.load %arg7[%c0_23, %c0_24] : memref<128x128xf32, #tpu.memory_space<vmem>>, vector<128x128xf32>
    %cst_25 = arith.constant dense<0.000000e+00> : vector<8x128xf32>
    %29 = tpu.matmul %27, %28, %cst_25 {dimension_numbers = #tpu.dot_dimension_numbers<[1], [0], [0], [1], [0, 0, 1, 1], [], []>} : vector<8x128xf32>, vector<128x128xf32>, vector<8x128xf32> -> vector<8x128xf32>
    %c0_26 = arith.constant 0 : index
    %c0_27 = arith.constant 0 : index
    %30 = vector.load %arg8[%c0_26, %c0_27] : memref<1x128xf32, #tpu.memory_space<vmem>>, vector<1x128xf32>
    %31 = vector.broadcast %30 : vector<1x128xf32> to vector<8x128xf32>
    %32 = arith.addf %29, %31 : vector<8x128xf32>
    %c0_28 = arith.constant 0 : index
    %c0_29 = arith.constant 0 : index
    %33 = vector.load %arg9[%c0_28, %c0_29] : memref<8x128xf32, #tpu.memory_space<vmem>>, vector<8x128xf32>
    tpu.vector_store %arg9[%c0_28, %c0_29], %32 {strides = array<i32>} : memref<8x128xf32, #tpu.memory_space<vmem>>, vector<8x128xf32>,
    return
  }
  func.func @transform_0(%arg0: i32) -> (i32, i32) {
    %c0_i32 = arith.constant 0 : i32
    %c0_i32_0 = arith.constant 0 : i32
    return %arg0, %c0_i32 : i32, i32
  }
  func.func @transform_1(%arg0: i32) -> (i32, i32) {
    %c0_i32 = arith.constant 0 : i32
    %c0_i32_0 = arith.constant 0 : i32
    return %arg0, %c0_i32 : i32, i32
  }
  func.func @transform_2(%arg0: i32) -> (i32, i32) {
    %c0_i32 = arith.constant 0 : i32
    %c0_i32_0 = arith.constant 0 : i32
    %c0_i32_1 = arith.constant 0 : i32
    return %c0_i32, %c0_i32_0 : i32, i32
  }
  func.func @transform_3(%arg0: i32) -> (i32, i32) {
    %c0_i32 = arith.constant 0 : i32
    %c0_i32_0 = arith.constant 0 : i32
    %c0_i32_1 = arith.constant 0 : i32
    return %c0_i32, %c0_i32_0 : i32, i32
  }
  func.func @transform_4(%arg0: i32) -> (i32, i32, i32) {
    %c0_i32 = arith.constant 0 : i32
    %c0_i32_0 = arith.constant 0 : i32
    %c0_i32_1 = arith.constant 0 : i32
    %c0_i32_2 = arith.constant 0 : i32
    return %c0_i32, %c0_i32_0, %c0_i32_1 : i32, i32, i32
  }
  func.func @transform_5(%arg0: i32) -> (i32, i32, i32) {
    %c0_i32 = arith.constant 0 : i32
    %c0_i32_0 = arith.constant 0 : i32
    %c0_i32_1 = arith.constant 0 : i32
    %c0_i32_2 = arith.constant 0 : i32
    return %c0_i32, %c0_i32_0, %c0_i32_1 : i32, i32, i32
  }
  func.func @transform_6(%arg0: i32) -> (i32, i32) {
    %c0_i32 = arith.constant 0 : i32
    %c0_i32_0 = arith.constant 0 : i32
    %c0_i32_1 = arith.constant 0 : i32
    return %c0_i32, %c0_i32_0 : i32, i32
  }
  func.func @transform_7(%arg0: i32) -> (i32, i32) {
    %c0_i32 = arith.constant 0 : i32
    %c0_i32_0 = arith.constant 0 : i32
    %c0_i32_1 = arith.constant 0 : i32
    return %c0_i32, %c0_i32_0 : i32, i32
  }
  func.func @transform_8(%arg0: i32) -> (i32, i32) {
    %c0_i32 = arith.constant 0 : i32
    %c0_i32_0 = arith.constant 0 : i32
    return %arg0, %c0_i32 : i32, i32
  }
}

</mosaic_0001>

<bundles_post_ra>
// kernel: tpu_custom_call.1
= control target key start
LH: loop header
LB: loop body
LE: loop exit
PB: predicated region body
PF: predicated region fallthrough
CT: control target
= control target key end

     0   :  { %13 = vsyncpa [#allocation3], 0  ;;  %s1009_s0 = inlined_call_operand.hbm [shape: f32[8,128], index: 0, kind: input, shape index: {}]   ;;  %s1010_s1 = inlined_call_operand.hbm [shape: f32[8,128], index: 1, kind: input, shape index: {}]   ;;  %s1011_s2 = inlined_call_operand.hbm [shape: f32[128,128], index: 2, kind: input, shape index: {}]   ;;  %s1012_s3 = inlined_call_operand.vmem [shape: f32[1,128], index: 3, kind: input, shape index: {}]   ;;  %s1013_s4 = inlined_call_operand.hbm [shape: f32[2,128,128], index: 4, kind: input, shape index: {}]   ;;  %s1014_s5 = inlined_call_operand.vmem [shape: f32[2,1,128], index: 5, kind: input, shape index: {}]   ;;  %s1015_s6 = inlined_call_operand.hbm [shape: f32[128,128], index: 6, kind: input, shape index: {}]   ;;  %s1016_s7 = inlined_call_operand.vmem [shape: f32[1,128], index: 7, kind: input, shape index: {}]   ;;  %s1017_s8 = inlined_call_operand.hbm [shape: f32[8,128], index: 8, kind: output, shape index: {}]  }
   0x1   :  { %14 = vsyncpa [#allocation6], 0 }
   0x2   :  { %15 = vsyncpa [#allocation9], 0 }
   0x3   :  { %16 = vsyncpa [#allocation4], 0  ;;  %s843_s27 = smov [#allocation5]  }
   0x4   :  { %s33_s28 = sshll.u32 %s843_s27, 4  ;;  %s34_s28 = int_to_ptr.vmem [resolvable:$true] %s33_s28 }
   0x5   :  { %s723_s29 = scalar_lea.vmem %s34_s28, 128  ;;  %p728_p1 = scmp.lt.s32.totalorder %s34_s28, %s34_s28 }
   0x6   :  { %p724_p0 = scmp.ne.s32.totalorder %s34_s28, %s723_s29  ;;  %p729_p2 = scmp.lt.s32.totalorder %s723_s29, %s723_s29 }
   0x8   :  { %p730_p3 = por %p729_p2, %p728_p1 }
   0xa   :  { %p731_p4 = pnand %p730_p3, %p724_p0 }
   0xc   :  { %734 = shalt.err (!%p731_p4)
}
   0xd   :  { %36 = dma.hbm_to_vmem [thread:$0]  %s1010_s1, 128, %s34_s28, [#allocation6]  }
   0xe   :  { %s844_s10 = smov [#allocation8]   ;;  %s845_s12 = smov [#allocation2]  }
   0xf   :  { %s56_s11 = sshll.u32 %s844_s10, 4  ;;  %s23_s13 = sshll.u32 %s845_s12, 4  ;;  %s57_s11 = int_to_ptr.vmem [resolvable:$true] %s56_s11  ;;  %s24_s13 = int_to_ptr.vmem [resolvable:$true] %s23_s13 }
  0x10   :  { %s743_s14 = scalar_lea.vmem %s57_s11, 4096  ;;  %p748_p6 = scmp.lt.s32.totalorder %s57_s11, %s57_s11 }
  0x11   :  { %p744_p5 = scmp.ne.s32.totalorder %s57_s11, %s743_s14  ;;  %p749_p7 = scmp.lt.s32.totalorder %s743_s14, %s743_s14 }
  0x13   :  { %p750_p8 = por %p749_p7, %p748_p6 }
  0x15   :  { %p751_p9 = pnand %p750_p8, %p744_p5 }
  0x17   :  { %754 = shalt.err (!%p751_p9)
}
  0x18   :  { %s846_s15 = smov 128   ;;  %s847_s16 = smov 8  }
  0x19   :  { %62 = dma.hbm_to_vmem [thread:$0]  %s1013_s4, 4096, %s57_s11, [#allocation9], %s846_s15, %s846_s15, %s847_s16  }
  0x1a   :  { %s763_s1 = scalar_lea.vmem %s24_s13, 128  ;;  %p768_p11 = scmp.lt.s32.totalorder %s24_s13, %s24_s13 }
  0x1b   :  { %p764_p10 = scmp.ne.s32.totalorder %s24_s13, %s763_s1  ;;  %p769_p12 = scmp.lt.s32.totalorder %s763_s1, %s763_s1 }
  0x1d   :  { %p770_p13 = por %p769_p12, %p768_p11 }
  0x1f   :  { %p771_p0 = pnand %p770_p13, %p764_p10 }
  0x21   :  { %774 = shalt.err (!%p771_p0)
}
  0x22   :  { %26 = dma.hbm_to_vmem [thread:$0]  %s1009_s0, 128, %s24_s13, [#allocation3]  }
  0x23   :  { %s848_s21 = smov [#allocation7]   ;;  %s849_s23 = smov [#allocation10]  }
  0x24   :  { %s42_s22 = sshll.u32 %s848_s21, 4  ;;  %s70_s24 = sshll.u32 %s849_s23, 4  ;;  %s43_s22 = int_to_ptr.vmem [resolvable:$true] %s42_s22  ;;  %s71_s24 = int_to_ptr.vmem [resolvable:$true] %s70_s24 }
  0x25   :  { %s783_s25 = scalar_lea.vmem %s43_s22, 2048  ;;  %p788_p2 = scmp.lt.s32.totalorder %s43_s22, %s43_s22 }
  0x26   :  { %p784_p1 = scmp.ne.s32.totalorder %s43_s22, %s783_s25  ;;  %p789_p3 = scmp.lt.s32.totalorder %s783_s25, %s783_s25 }
  0x28   :  { %p790_p4 = por %p789_p3, %p788_p2 }
  0x2a   :  { %p791_p5 = pnand %p790_p4, %p784_p1 }
  0x2c   :  { %794 = shalt.err (!%p791_p5)
}
  0x2d   :  { %48 = dma.hbm_to_vmem [thread:$0]  %s1011_s2, 2048, %s43_s22, [#allocation6], %s846_s15, %s846_s15, %s847_s16  }
  0x2e   :  { %s803_s0 = scalar_lea.vmem %s71_s24, 2048  ;;  %p808_p7 = scmp.lt.s32.totalorder %s71_s24, %s71_s24 }
  0x2f   :  { %p804_p6 = scmp.ne.s32.totalorder %s71_s24, %s803_s0  ;;  %p809_p8 = scmp.lt.s32.totalorder %s803_s0, %s803_s0 }
  0x31   :  { %p810_p9 = por %p809_p8, %p808_p7 }
  0x33   :  { %p811_p10 = pnand %p810_p9, %p804_p6 }
  0x35   :  { %814 = shalt.err (!%p811_p10)
}
  0x36   :  { %76 = dma.hbm_to_vmem [thread:$0]  %s1015_s6, 2048, %s71_s24, [#allocation9], %s846_s15, %s846_s15, %s847_s16  }
  0x37   :  { %835 = dma.done.wait [#allocation3], 128  }
  0x38   :  { %836 = vsyncadd [#allocation3], 4294967168 }
  0x39   :  { %837 = dma.done.wait [#allocation6], 2176  }
  0x3a   :  { %838 = vsyncadd [#allocation6], 4294965120 }
  0x3b   :  { %839 = dma.done.wait [#allocation9], 6144  }
  0x3c   :  { %840 = vsyncadd [#allocation9], 4294961152  ;;  %v850_v0 = vmov 0.0   ;;  %vm851_vm0 = vmmov 0   ;;  %v110_v1 = vld [vmem:[#allocation7 + $0x78] sm:$0xff]  ;;  %v109_v2 = vld [vmem:[#allocation7 + $0x70] sm:$0xff] }
  0x3d   :  { %565 = vmatprep.subr.mxu0 %v850_v0  ;;  %597 = vmatprep.mubr.msk.f32.mxu0 %vm851_vm0, %v850_v0  ;;  %v108_v3 = vld [vmem:[#allocation7 + $0x68] sm:$0xff]  ;;  %v107_v4 = vld [vmem:[#allocation7 + $0x60] sm:$0xff]  ;;  %v206_v5 = vld [vmem:[#allocation8 + $0x78] sm:$0xff]  ;;  %s852_s12 = smov [#allocation11]  }
  0x3e   :  { %600 = vmatprep.subr.mxu1 %v850_v0  ;;  %632 = vmatprep.mubr.msk.f32.mxu1 %vm851_vm0, %v850_v0  ;;  %v106_v6 = vld [vmem:[#allocation7 + $0x58] sm:$0xff]  ;;  %v205_v7 = vld [vmem:[#allocation8 + $0x70] sm:$0xff]  ;;  %v204_v8 = vld [vmem:[#allocation8 + $0x68] sm:$0xff]  ;;  %s481_s13 = sshll.u32 %s852_s12, 4  ;;  %s482_s13 = int_to_ptr.vmem [resolvable:$true] %s481_s13 }
  0x3f   :  { %566 = vmatpush3.msra.mxu0 %v110_v1  ;;  %601 = vmatpush3.msra.mxu1 %v206_v5  ;;  %v105_v9 = vld [vmem:[#allocation7 + $0x50] sm:$0xff]  ;;  %v203_v10 = vld [vmem:[#allocation8 + $0x60] sm:$0xff]  ;;  %v104_v11 = vld [vmem:[#allocation7 + $0x48] sm:$0xff]  ;;  %s815_s14 = scalar_lea.vmem %s482_s13, 128  ;;  %p820_p12 = scmp.lt.s32.totalorder %s482_s13, %s482_s13 }
  0x40   :  { %567 = vmatprep.subr.mxu0 %v850_v0  ;;  %602 = vmatprep.subr.mxu1 %v850_v0  ;;  %v202_v12 = vld [vmem:[#allocation8 + $0x58] sm:$0xff]  ;;  %v103_v13 = vld [vmem:[#allocation7 + $0x40] sm:$0xff]  ;;  %v201_v14 = vld [vmem:[#allocation8 + $0x50] sm:$0xff]  ;;  %p816_p11 = scmp.ne.s32.totalorder %s482_s13, %s815_s14  ;;  %p821_p13 = scmp.lt.s32.totalorder %s815_s14, %s815_s14 }
  0x41   :  { %568 = vmatpush3.msra.mxu0 %v109_v2  ;;  %603 = vmatpush3.msra.mxu1 %v205_v7  ;;  %v102_v15 = vld [vmem:[#allocation7 + $0x38] sm:$0xff]  ;;  %v200_v16 = vld [vmem:[#allocation8 + $0x48] sm:$0xff]  ;;  %v101_v17 = vld [vmem:[#allocation7 + $0x30] sm:$0xff] }
  0x42   :  { %569 = vmatprep.subr.mxu0 %v850_v0  ;;  %604 = vmatprep.subr.mxu1 %v850_v0  ;;  %v199_v18 = vld [vmem:[#allocation8 + $0x40] sm:$0xff]  ;;  %v100_v19 = vld [vmem:[#allocation7 + $0x28] sm:$0xff]  ;;  %v198_v20 = vld [vmem:[#allocation8 + $0x38] sm:$0xff]  ;;  %p822_p0 = por %p821_p13, %p820_p12 }
  0x43   :  { %570 = vmatpush3.msra.mxu0 %v108_v3  ;;  %605 = vmatpush3.msra.mxu1 %v204_v8  ;;  %v99_v21 = vld [vmem:[#allocation7 + $0x20] sm:$0xff]  ;;  %v197_v22 = vld [vmem:[#allocation8 + $0x30] sm:$0xff]  ;;  %v98_v23 = vld [vmem:[#allocation7 + $0x18] sm:$0xff] }
  0x44   :  { %571 = vmatprep.subr.mxu0 %v850_v0  ;;  %606 = vmatprep.subr.mxu1 %v850_v0  ;;  %v196_v24 = vld [vmem:[#allocation8 + $0x28] sm:$0xff]  ;;  %v97_v25 = vld [vmem:[#allocation7 + $0x10] sm:$0xff]  ;;  %v195_v26 = vld [vmem:[#allocation8 + $0x20] sm:$0xff]  ;;  %p823_p1 = pnand %p822_p0, %p816_p11 }
  0x45   :  { %572 = vmatpush3.msra.mxu0 %v107_v4  ;;  %607 = vmatpush3.msra.mxu1 %v203_v10  ;;  %v96_v27 = vld [vmem:[#allocation7 + $0x8] sm:$0xff]  ;;  %v95_v28 = vld [vmem:[#allocation7] sm:$0xff]  ;;  %v94_v29 = vld [vmem:[#allocation2] sm:$0xff] }
  0x46   :  { %573 = vmatprep.subr.mxu0 %v850_v0  ;;  %608 = vmatprep.subr.mxu1 %v850_v0  ;;  %v194_v30 = vld [vmem:[#allocation8 + $0x18] sm:$0xff]  ;;  %v193_v31 = vld [vmem:[#allocation8 + $0x10] sm:$0xff]  ;;  %v192_v32 = vld [vmem:[#allocation8 + $0x8] sm:$0xff] }
  0x47   :  { %574 = vmatpush3.msra.mxu0 %v106_v6  ;;  %609 = vmatpush3.msra.mxu1 %v202_v12  ;;  %v191_v33 = vld [vmem:[#allocation8] sm:$0xff]  ;;  %v301_v34 = vld [vmem:[#allocation8 + $0xf8] sm:$0xff]  ;;  %v300_v35 = vld [vmem:[#allocation8 + $0xf0] sm:$0xff] }
  0x48   :  { %575 = vmatprep.subr.mxu0 %v850_v0  ;;  %610 = vmatprep.subr.mxu1 %v850_v0  ;;  %v299_v36 = vld [vmem:[#allocation8 + $0xe8] sm:$0xff]  ;;  %v298_v37 = vld [vmem:[#allocation8 + $0xe0] sm:$0xff]  ;;  %v297_v38 = vld [vmem:[#allocation8 + $0xd8] sm:$0xff] }
  0x49   :  { %576 = vmatpush3.msra.mxu0 %v105_v9  ;;  %611 = vmatpush3.msra.mxu1 %v201_v14  ;;  %v296_v39 = vld [vmem:[#allocation8 + $0xd0] sm:$0xff]  ;;  %v295_v40 = vld [vmem:[#allocation8 + $0xc8] sm:$0xff]  ;;  %v294_v41 = vld [vmem:[#allocation8 + $0xc0] sm:$0xff] }
  0x4a   :  { %577 = vmatprep.subr.mxu0 %v850_v0  ;;  %612 = vmatprep.subr.mxu1 %v850_v0  ;;  %v293_v42 = vld [vmem:[#allocation8 + $0xb8] sm:$0xff]  ;;  %v292_v43 = vld [vmem:[#allocation8 + $0xb0] sm:$0xff]  ;;  %v291_v44 = vld [vmem:[#allocation8 + $0xa8] sm:$0xff] }
  0x4b   :  { %578 = vmatpush3.msra.mxu0 %v104_v11  ;;  %613 = vmatpush3.msra.mxu1 %v200_v16  ;;  %v290_v45 = vld [vmem:[#allocation8 + $0xa0] sm:$0xff]  ;;  %v289_v46 = vld [vmem:[#allocation8 + $0x98] sm:$0xff]  ;;  %v492_v49 = vld [vmem:[%s1012_s3] ss:$0 sm:$0xff] }
  0x4c   :  { %579 = vmatprep.subr.mxu0 %v850_v0  ;;  %614 = vmatprep.subr.mxu1 %v850_v0  ;;  %v111_v47 = vld [vmem:[#allocation5] sm:$0xff]  ;;  %v288_v54 = vld [vmem:[#allocation8 + $0x90] sm:$0xff]  ;;  %v287_v55 = vld [vmem:[#allocation8 + $0x88] sm:$0xff] }
  0x4d   :  { %580 = vmatpush3.msra.mxu0 %v103_v13  ;;  %615 = vmatpush3.msra.mxu1 %v199_v18  ;;  %v286_v56 = vld [vmem:[#allocation8 + $0x80] sm:$0xff]  ;;  %v396_v57 = vld [vmem:[#allocation10 + $0x78] sm:$0xff]  ;;  %v395_v58 = vld [vmem:[#allocation10 + $0x70] sm:$0xff] }
  0x4e   :  { %581 = vmatprep.subr.mxu0 %v850_v0  ;;  %616 = vmatprep.subr.mxu1 %v850_v0  ;;  %v394_v59 = vld [vmem:[#allocation10 + $0x68] sm:$0xff]  ;;  %v393_v60 = vld [vmem:[#allocation10 + $0x60] sm:$0xff]  ;;  %v392_v61 = vld [vmem:[#allocation10 + $0x58] sm:$0xff] }
  0x4f   :  { %582 = vmatpush3.msra.mxu0 %v102_v15  ;;  %617 = vmatpush3.msra.mxu1 %v198_v20  ;;  %v391_v62 = vld [vmem:[#allocation10 + $0x50] sm:$0xff]  ;;  %v390_v63 = vld [vmem:[#allocation10 + $0x48] sm:$0xff]  ;;  %v389_v1 = vld [vmem:[#allocation10 + $0x40] sm:$0xff] }
  0x50   :  { %583 = vmatprep.subr.mxu0 %v850_v0  ;;  %618 = vmatprep.subr.mxu1 %v850_v0  ;;  %v388_v2 = vld [vmem:[#allocation10 + $0x38] sm:$0xff]  ;;  %v387_v3 = vld [vmem:[#allocation10 + $0x30] sm:$0xff]  ;;  %v386_v4 = vld [vmem:[#allocation10 + $0x28] sm:$0xff] }
  0x51   :  { %584 = vmatpush3.msra.mxu0 %v101_v17  ;;  %619 = vmatpush3.msra.mxu1 %v197_v22  ;;  %v385_v5 = vld [vmem:[#allocation10 + $0x20] sm:$0xff]  ;;  %v384_v6 = vld [vmem:[#allocation10 + $0x18] sm:$0xff]  ;;  %v493_v7 = vld [vmem:[%s1014_s5] ss:$0 sm:$0xff] }
  0x52   :  { %585 = vmatprep.subr.mxu0 %v850_v0  ;;  %620 = vmatprep.subr.mxu1 %v850_v0  ;;  %v383_v12 = vld [vmem:[#allocation10 + $0x10] sm:$0xff]  ;;  %v382_v13 = vld [vmem:[#allocation10 + $0x8] sm:$0xff]  ;;  %v381_v14 = vld [vmem:[#allocation10] sm:$0xff] }
  0x53   :  { %586 = vmatpush3.msra.mxu0 %v100_v19  ;;  %621 = vmatpush3.msra.mxu1 %v196_v24  ;;  %v495_v15 = vld [vmem:[%s1014_s5 + $0x1] ss:$0 sm:$0xff]  ;;  %v496_v20 = vld [vmem:[%s1016_s7] ss:$0 sm:$0xff] }
  0x54   :  { %587 = vmatprep.subr.mxu0 %v850_v0  ;;  %622 = vmatprep.subr.mxu1 %v850_v0 }
  0x55   :  { %588 = vmatpush3.msra.mxu0 %v99_v21  ;;  %623 = vmatpush3.msra.mxu1 %v195_v26 }
  0x56   :  { %589 = vmatprep.subr.mxu0 %v850_v0  ;;  %624 = vmatprep.subr.mxu1 %v850_v0 }
  0x57   :  { %590 = vmatpush3.msra.mxu0 %v98_v23  ;;  %625 = vmatpush3.msra.mxu1 %v194_v30 }
  0x58   :  { %591 = vmatprep.subr.mxu0 %v850_v0  ;;  %626 = vmatprep.subr.mxu1 %v850_v0 }
  0x59   :  { %592 = vmatpush3.msra.mxu0 %v97_v25  ;;  %627 = vmatpush3.msra.mxu1 %v193_v31 }
  0x5a   :  { %593 = vmatprep.subr.mxu0 %v850_v0  ;;  %628 = vmatprep.subr.mxu1 %v850_v0 }
  0x5b   :  { %594 = vmatpush3.msra.mxu0 %v96_v27  ;;  %629 = vmatpush3.msra.mxu1 %v192_v32 }
  0x5c   :  { %595 = vmatprep.subr.mxu0 %v850_v0  ;;  %630 = vmatprep.subr.mxu1 %v850_v0 }
  0x5d   :  { %596 = vmatpush3.msra.mxu0 %v95_v28  ;;  %631 = vmatpush3.msra.mxu1 %v191_v33 }
  0x5e   :  { %598 = vmatmul.mubr.f32.vlgmr.msra.gmra.mxu0 %v94_v29  ;;  %635 = vmatprep.subr.mxu0 %v850_v0 }
  0x5f   :  { %667 = vmatprep.mubr.msk.f32.mxu0 %vm851_vm0, %v850_v0  ;;  %670 = vmatprep.subr.mxu1 %v850_v0 }
  0x60   :  { %636 = vmatpush3.msra.mxu0 %v301_v34 }
  0x61   :  { %637 = vmatprep.subr.mxu0 %v850_v0 }
  0x62   :  { %638 = vmatpush3.msra.mxu0 %v300_v35 }
  0x63   :  { %639 = vmatprep.subr.mxu0 %v850_v0 }
  0x64   :  { %640 = vmatpush3.msra.mxu0 %v299_v36 }
  0x65   :  { %641 = vmatprep.subr.mxu0 %v850_v0 }
  0x66   :  { %642 = vmatpush3.msra.mxu0 %v298_v37 }
  0x67   :  { %643 = vmatprep.subr.mxu0 %v850_v0 }
  0x68   :  { %644 = vmatpush3.msra.mxu0 %v297_v38 }
  0x69   :  { %645 = vmatprep.subr.mxu0 %v850_v0 }
  0x6a   :  { %646 = vmatpush3.msra.mxu0 %v296_v39 }
  0x6b   :  { %647 = vmatprep.subr.mxu0 %v850_v0 }
  0x6c   :  { %648 = vmatpush3.msra.mxu0 %v295_v40 }
  0x6d   :  { %649 = vmatprep.subr.mxu0 %v850_v0 }
  0x6e   :  { %650 = vmatpush3.msra.mxu0 %v294_v41 }
  0x6f   :  { %651 = vmatprep.subr.mxu0 %v850_v0 }
  0x70   :  { %652 = vmatpush3.msra.mxu0 %v293_v42 }
  0x71   :  { %653 = vmatprep.subr.mxu0 %v850_v0 }
  0x72   :  { %654 = vmatpush3.msra.mxu0 %v292_v43 }
  0x73   :  { %655 = vmatprep.subr.mxu0 %v850_v0 }
  0x74   :  { %656 = vmatpush3.msra.mxu0 %v291_v44 }
  0x75   :  { %657 = vmatprep.subr.mxu0 %v850_v0 }
  0x76   :  { %658 = vmatpush3.msra.mxu0 %v290_v45 }
  0x77   :  { %659 = vmatprep.subr.mxu0 %v850_v0 }
  0x78   :  { %660 = vmatpush3.msra.mxu0 %v289_v46 }
  0x79   :  { %661 = vmatprep.subr.mxu0 %v850_v0 }
  0x7a   :  { %662 = vmatpush3.msra.mxu0 %v288_v54 }
  0x7b   :  { %663 = vmatprep.subr.mxu0 %v850_v0 }
  0x7c   :  { %664 = vmatpush3.msra.mxu0 %v287_v55 }
  0x7d   :  { %665 = vmatprep.subr.mxu0 %v850_v0 }
  0x7e   :  { %666 = vmatpush3.msra.mxu0 %v286_v56 }
 0x11e   :  { %v178_v48 = vpop.f32.mrf.mxu0 }
 0x11f   :  { %v179_v50 = vadd.f32 %v178_v48, %v111_v47 }
 0x120   :  { %v599_v51 = vpop.f32.mrf.mxu0 }
 0x121   :  { %v189_v52 = vadd.f32 %v492_v49, %v179_v50 }
 0x123   :  { %v190_v53 = vmax.f32 %v189_v52, 0.0 }
 0x125   :  { %633 = vmatmul.mubr.f32.vlgmr.msra.gmra.mxu1 %v190_v53 }
 0x126   :  { %702 = vmatprep.mubr.msk.f32.mxu1 %vm851_vm0, %v850_v0  ;;  %671 = vmatpush3.msra.mxu1 %v396_v57 }
 0x127   :  { %672 = vmatprep.subr.mxu1 %v850_v0 }
 0x128   :  { %673 = vmatpush3.msra.mxu1 %v395_v58 }
 0x129   :  { %674 = vmatprep.subr.mxu1 %v850_v0 }
 0x12a   :  { %675 = vmatpush3.msra.mxu1 %v394_v59 }
 0x12b   :  { %676 = vmatprep.subr.mxu1 %v850_v0 }
 0x12c   :  { %677 = vmatpush3.msra.mxu1 %v393_v60 }
 0x12d   :  { %678 = vmatprep.subr.mxu1 %v850_v0 }
 0x12e   :  { %679 = vmatpush3.msra.mxu1 %v392_v61 }
 0x12f   :  { %680 = vmatprep.subr.mxu1 %v850_v0 }
 0x130   :  { %681 = vmatpush3.msra.mxu1 %v391_v62 }
 0x131   :  { %682 = vmatprep.subr.mxu1 %v850_v0 }
 0x132   :  { %683 = vmatpush3.msra.mxu1 %v390_v63 }
 0x133   :  { %684 = vmatprep.subr.mxu1 %v850_v0 }
 0x134   :  { %685 = vmatpush3.msra.mxu1 %v389_v1 }
 0x135   :  { %686 = vmatprep.subr.mxu1 %v850_v0 }
 0x136   :  { %687 = vmatpush3.msra.mxu1 %v388_v2 }
 0x137   :  { %688 = vmatprep.subr.mxu1 %v850_v0 }
 0x138   :  { %689 = vmatpush3.msra.mxu1 %v387_v3 }
 0x139   :  { %690 = vmatprep.subr.mxu1 %v850_v0 }
 0x13a   :  { %691 = vmatpush3.msra.mxu1 %v386_v4 }
 0x13b   :  { %692 = vmatprep.subr.mxu1 %v850_v0 }
 0x13c   :  { %693 = vmatpush3.msra.mxu1 %v385_v5 }
 0x13d   :  { %694 = vmatprep.subr.mxu1 %v850_v0 }
 0x13e   :  { %695 = vmatpush3.msra.mxu1 %v384_v6 }
 0x13f   :  { %696 = vmatprep.subr.mxu1 %v850_v0 }
 0x140   :  { %697 = vmatpush3.msra.mxu1 %v383_v12 }
 0x141   :  { %698 = vmatprep.subr.mxu1 %v850_v0 }
 0x142   :  { %699 = vmatpush3.msra.mxu1 %v382_v13 }
 0x143   :  { %700 = vmatprep.subr.mxu1 %v850_v0 }
 0x144   :  { %701 = vmatpush3.msra.mxu1 %v381_v14 }
 0x1e5   :  { %v280_v8 = vpop.f32.mrf.mxu1 }
 0x1e6   :  { %v281_v9 = vadd.f32 %v493_v7, %v280_v8 }
 0x1e7   :  { %v634_v10 = vpop.f32.mrf.mxu1 }
 0x1e8   :  { %v284_v11 = vmax.f32 %v281_v9, 0.0 }
 0x1ea   :  { %668 = vmatmul.mubr.f32.vlgmr.msra.gmra.mxu0 %v284_v11 }
 0x2aa   :  { %v376_v16 = vpop.f32.mrf.mxu0 }
 0x2ab   :  { %v377_v17 = vadd.f32 %v495_v15, %v376_v16 }
 0x2ac   :  { %v669_v18 = vpop.f32.mrf.mxu0 }
 0x2ad   :  { %v380_v19 = vmax.f32 %v377_v17, 0.0 }
 0x2af   :  { %703 = vmatmul.mubr.f32.vlgmr.msra.gmra.mxu1 %v380_v19 }
 0x36f   :  { %v470_v21 = vpop.f32.mrf.mxu1 }
 0x370   :  { %v471_v22 = vadd.f32 %v496_v20, %v470_v21 }
 0x371   :  { %v704_v0 = vpop.f32.mrf.mxu1 }
 0x372   :  { %474 = vst [vmem:[#allocation11] sm:$0xff] %v471_v22 }
 0x373   :  { %826 = shalt.err (!%p823_p1)
}
 0x374   :  { %484 = dma.vmem_to_hbm [thread:$0]  %s482_s13, 128, %s1017_s8, [#allocation4]  }
 0x375   :  { %841 = dma.done.wait [#allocation4], 128  }
 0x376   :  { %842 = vsyncadd [#allocation4], 4294967168 }
 0x377   :  { %488 = vsyncpa [#allocation3], 1 }
 0x378   :  { %489 = vsyncpa [#allocation6], 1 }
 0x379   :  { %490 = vsyncpa [#allocation9], 1 }
 0x37a   :  { %491 = vsyncpa [#allocation4], 1 }

</bundles_post_ra>
